<compile_context>
chip_gen: v6e
topology: v6e:2x2x1
jax: 0.10.0
libtpu: 0.0.40
codegen_flags: <defaults>
</compile_context>

<pallas_src>
import functools

import jax
import jax.numpy as jnp
from jax.experimental import pallas as pl
from jax.experimental.pallas import tpu as pltpu


@functools.lru_cache(maxsize=None)
def _tpu_budgets():
    """Returns (vmem_limit_bytes, slab_budget_bytes, likely_two_tensorcores)."""
    vmem_phys = 64 * 1024 * 1024                    # conservative default (v7x per-TC)
    try:
        info = pltpu.get_tpu_info()
        vmem_phys = int(getattr(info, "vmem_capacity_bytes", vmem_phys))
    except Exception:
        pass
    if vmem_phys >= 100 * 1024 * 1024:
        # v5e / v6e class: 128 MiB physical VMEM, single TensorCore per chip.
        return 104 * 1024 * 1024, 96 * 1024 * 1024, False
    # v7x class: 64 MiB physical per TC -> stay well below for Mosaic scratch;
    # 2 TensorCores per chip.
    return 56 * 1024 * 1024, 44 * 1024 * 1024, True


# --------------------- fused single-pass kernel (grid over B) ---------------------

def _se_fused_kernel(x_ref, w1t_ref, b1_ref, w2t_ref, b2_ref, o_ref, *,
                     t_chunk, n_chunks):
    c = x_ref.shape[1]
    # squeeze: sum over time in f32.  Static 128-aligned chunk slices keep the
    # f32 cast temporary at (C, t_chunk) instead of a full (C, T) slab for bf16.
    ssum = jnp.zeros((1, c), jnp.float32)
    for i in range(n_chunks):
        chunk = x_ref[:, :, i * t_chunk:(i + 1) * t_chunk]        # (1, C, t_chunk)
        ssum = ssum + jnp.sum(chunk.astype(jnp.float32), axis=-1)
    m = ssum * (1.0 / float(n_chunks * t_chunk))                  # (1, C) mean over T
    # excitation MLP in f32 (negligible FLOPs, hidden under the slab DMA)
    z1 = jnp.dot(m, w1t_ref[...], preferred_element_type=jnp.float32) + b1_ref[...]
    z1 = jnp.maximum(z1, 0.0)
    z2 = jnp.dot(z1, w2t_ref[...], preferred_element_type=jnp.float32) + b2_ref[...]
    gate = jax.nn.sigmoid(z2)                                     # (1, C) f32
    # scale in x's native dtype (gate rounded to x.dtype for bf16 inputs; no
    # second f32 materialization of the slab)
    o_ref[...] = x_ref[...] * gate.astype(o_ref.dtype)[:, :, None]


def _se_connect_fused(x, w1t, b1_2d, w2t, b2_2d, t_chunk, n_chunks,
                      vmem_limit, donate_x):
    B, C, T = x.shape
    Cs = w1t.shape[1]
    itemsize = x.dtype.itemsize
    wbytes = (C * Cs + Cs + Cs * C + C) * 4
    cost = pl.CostEstimate(
        flops=4 * B * C * Cs + 2 * B * C * T,
        transcendentals=B * C,
        bytes_accessed=2 * B * C * T * itemsize + wbytes,
    )
    kernel = functools.partial(_se_fused_kernel, t_chunk=t_chunk, n_chunks=n_chunks)
    return pl.pallas_call(
        kernel,
        out_shape=jax.ShapeDtypeStruct((B, C, T), x.dtype),
        grid=(B,),
        in_specs=[
            pl.BlockSpec((1, C, T), lambda b: (b, 0, 0)),
            pl.BlockSpec((C, Cs), lambda b: (0, 0)),
            pl.BlockSpec((1, Cs), lambda b: (0, 0)),
            pl.BlockSpec((Cs, C), lambda b: (0, 0)),
            pl.BlockSpec((1, C), lambda b: (0, 0)),
        ],
        out_specs=pl.BlockSpec((1, C, T), lambda b: (b, 0, 0)),
        compiler_params=pltpu.CompilerParams(
            dimension_semantics=("parallel",),
            vmem_limit_bytes=vmem_limit,
        ),
        cost_estimate=cost,
        input_output_aliases={0: 0} if donate_x else {},
    )(x, w1t, b1_2d, w2t, b2_2d)


# ----------------- two-pass path: streaming mean kernel + scale kernel -------------

def _se_mean_kernel(x_ref, m_ref, *, inv_t):
    t = pl.program_id(1)

    @pl.when(t == 0)
    def _():
        m_ref[...] = jnp.zeros_like(m_ref)

    m_ref[...] += jnp.sum(x_ref[...].astype(jnp.float32), axis=-1)[:, None, :]

    @pl.when(t == pl.num_programs(1) - 1)
    def _():
        m_ref[...] *= inv_t


def _se_mean(x, t_tile, t_total, vmem_limit):
    B, C, T = x.shape
    n_t = T // t_tile
    itemsize = x.dtype.itemsize
    return pl.pallas_call(
        functools.partial(_se_mean_kernel, inv_t=1.0 / float(t_total)),
        out_shape=jax.ShapeDtypeStruct((B, 1, C), jnp.float32),
        grid=(B, n_t),
        in_specs=[pl.BlockSpec((1, C, t_tile), lambda b, t: (b, 0, t))],
        out_specs=pl.BlockSpec((1, 1, C), lambda b, t: (b, 0, 0)),
        compiler_params=pltpu.CompilerParams(
            dimension_semantics=("parallel", "arbitrary"),
            vmem_limit_bytes=vmem_limit,
        ),
        cost_estimate=pl.CostEstimate(
            flops=B * C * T,
            transcendentals=0,
            bytes_accessed=B * C * T * itemsize + B * C * 4,
        ),
    )(x)


def _se_scale_kernel(x_ref, gate_ref, o_ref):
    g = gate_ref[...][:, 0, :]                                    # (1, C) f32
    o_ref[...] = x_ref[...] * g.astype(o_ref.dtype)[:, :, None]


def _se_scale(x, gate3, t_tile, vmem_limit, donate_x):
    B, C, T = x.shape
    n_t = T // t_tile
    itemsize = x.dtype.itemsize
    return pl.pallas_call(
        _se_scale_kernel,
        out_shape=jax.ShapeDtypeStruct((B, C, T), x.dtype),
        grid=(B, n_t),
        in_specs=[
            pl.BlockSpec((1, C, t_tile), lambda b, t: (b, 0, t)),
            pl.BlockSpec((1, 1, C), lambda b, t: (b, 0, 0)),
        ],
        out_specs=pl.BlockSpec((1, C, t_tile), lambda b, t: (b, 0, t)),
        compiler_params=pltpu.CompilerParams(
            dimension_semantics=("parallel", "parallel"),
            vmem_limit_bytes=vmem_limit,
        ),
        cost_estimate=pl.CostEstimate(
            flops=B * C * T,
            transcendentals=0,
            bytes_accessed=2 * B * C * T * itemsize + B * C * 4,
        ),
        input_output_aliases={0: 0} if donate_x else {},
    )(x, gate3)


# ------------------------------------ wrapper -------------------------------------

_T_TILE_CANDIDATES = (8192, 4096, 2048, 1024, 512, 256, 128)   # big tiles for v5e too
_T_CHUNK_CANDIDATES = (1024, 512, 256, 128)


def se_connect(x, w1, b1, w2, b2, *, slab_budget_bytes=None, vmem_limit_bytes=None,
               donate_x=False):
    """SE_Connect forward. x: (B, C, T); w1: (C//s, C); b1: (C//s,); w2: (C, C//s); b2: (C,)."""
    B, C, T = x.shape
    Cs = w1.shape[0]
    # layout prep (tiny; pre-transposed weights so in-kernel matmuls are
    # (B,C)@(C,C//s) and (B,C//s)@(C//s,C))
    w1t = w1.T
    w2t = w2.T
    b1_2d = b1.reshape(1, Cs)
    b2_2d = b2.reshape(1, C)

    vmem_limit_def, slab_budget_def, two_tc = _tpu_budgets()
    slab_budget = slab_budget_def if slab_budget_bytes is None else slab_budget_bytes
    vmem_limit = vmem_limit_def if vmem_limit_bytes is None else vmem_limit_bytes

    itemsize = x.dtype.itemsize

    # fused-path chunking of the time reduction: only needed for sub-f32 dtypes
    # (the f32 cast of an f32 slab is free).  Chunks are static 128-multiples.
    t_chunk, n_chunks = T, 1
    if itemsize < 4 and T % 128 == 0:
        for cand in _T_CHUNK_CANDIDATES:
            if T % cand == 0:
                t_chunk, n_chunks = cand, T // cand
                break
    # per-step fused working set: double-buffered input + output slabs, plus the
    # f32 cast temporary (chunk-sized when chunked, full-slab otherwise).
    fused_extra = C * t_chunk * 4 if itemsize < 4 else 0
    fused_ws = 4 * C * T * itemsize + fused_extra

    # Prefer the T-tiled two-pass path when the whole-T slab would blow the VMEM
    # budget, or (v7x-class, 2 TCs) when B == 1 so the scale pass can shard its
    # T axis across both TensorCores.
    prefer_two_pass = (fused_ws > slab_budget) or (
        two_tc and B < 2 and T % 128 == 0 and C * T * itemsize >= (2 << 20))

    if not prefer_two_pass:
        return _se_connect_fused(x, w1t, b1_2d, w2t, b2_2d, t_chunk, n_chunks,
                                 vmem_limit, donate_x)

    # ---- two-pass path ----
    # Pad T to a lane-dense multiple of 128 if needed (zeros don't change the
    # sum; we divide by the true T below, and slice the padded output off).
    T_pad = ((T + 127) // 128) * 128
    x_p = x if T_pad == T else jnp.pad(x, ((0, 0), (0, 0), (0, T_pad - T)))

    def pick_tile(per_t_bytes):
        for cand in _T_TILE_CANDIDATES:
            if T_pad % cand == 0 and per_t_bytes * cand <= slab_budget:
                return cand
        return 128

    # pass 1 (mean): only the input slab is double-buffered (+ f32 cast temp for
    # sub-f32 dtypes) -> gets its own, larger tile.
    t_tile_1 = pick_tile(C * (2 * itemsize + (4 if itemsize < 4 else 0)))
    # pass 2 (scale): input + output slabs, both double-buffered.
    t_tile_2 = pick_tile(C * 4 * itemsize)

    means = _se_mean(x_p, t_tile_1, T, vmem_limit)                 # (B, 1, C) f32
    # tiny excitation MLP as one batched matmul in plain JAX (keeps weights out
    # of the streaming kernels; no degenerate M=1 matmul in a pipeline epilogue)
    m = means[:, 0, :]                                             # (B, C) f32
    h = jnp.maximum(jnp.dot(m, w1t, preferred_element_type=jnp.float32) + b1_2d, 0.0)
    gate = jax.nn.sigmoid(jnp.dot(h, w2t, preferred_element_type=jnp.float32) + b2_2d)
    gate3 = gate.reshape(B, 1, C).astype(jnp.float32)

    donate_scale = donate_x and (T_pad == T)
    out = _se_scale(x_p, gate3, t_tile_2, vmem_limit, donate_scale)
    return out if T_pad == T else out[:, :, :T]


def se_connect_ref(x, w1, b1, w2, b2):
    """Pure-JAX reference matching the PyTorch forward."""
    m = x.mean(axis=2)
    h = jnp.maximum(m @ w1.T + b1, 0.0)
    g = jax.nn.sigmoid(h @ w2.T + b2)
    return x * g[:, :, None]


if __name__ == "__main__":
    key = jax.random.PRNGKey(0)
    ks = jax.random.split(key, 8)
    s = 4

    # --- config 1: small f32 shapes, fused grid-over-B path ---
    B, C, T = 2, 16, 16
    Cs = C // s
    x = jax.random.normal(ks[0], (B, C, T), dtype=jnp.float32)
    w1 = jax.random.normal(ks[1], (Cs, C), dtype=jnp.float32) * 0.1
    b1 = jax.random.normal(ks[2], (Cs,), dtype=jnp.float32) * 0.1
    w2 = jax.random.normal(ks[3], (C, Cs), dtype=jnp.float32) * 0.1
    b2 = jax.random.normal(ks[4], (C,), dtype=jnp.float32) * 0.1

    ref = se_connect_ref(x, w1, b1, w2, b2)
    out = jax.block_until_ready(se_connect(x, w1, b1, w2, b2))
    assert out.shape == (B, C, T)
    assert jnp.allclose(out, ref, atol=1e-5, rtol=1e-5), "fused path mismatch"

    # same path with in-place-style aliasing (donated x)
    out_d = jax.block_until_ready(se_connect(x, w1, b1, w2, b2, donate_x=True))
    assert jnp.allclose(out_d, ref, atol=1e-5, rtol=1e-5), "donated fused path mismatch"

    # --- config 2: force the two-pass path (lane-dense 128-wide T tiles, T-accumulation) ---
    B2, C2, T2 = 2, 128, 256
    Cs2 = C2 // s
    x2 = jax.random.normal(ks[5], (B2, C2, T2), dtype=jnp.float32)
    w1b = jax.random.normal(ks[1], (Cs2, C2), dtype=jnp.float32) * 0.05
    b1b = jax.random.normal(ks[2], (Cs2,), dtype=jnp.float32) * 0.05
    w2b = jax.random.normal(ks[3], (C2, Cs2), dtype=jnp.float32) * 0.05
    b2b = jax.random.normal(ks[4], (C2,), dtype=jnp.float32) * 0.05

    ref2 = se_connect_ref(x2, w1b, b1b, w2b, b2b)
    out2 = jax.block_until_ready(
        se_connect(x2, w1b, b1b, w2b, b2b, slab_budget_bytes=128 * 1024))
    assert out2.shape == (B2, C2, T2)
    assert jnp.allclose(out2, ref2, atol=1e-4, rtol=1e-4), "two-pass path mismatch"

    # --- config 3: ragged T (not a multiple of 128) forced onto the padded two-pass path ---
    B3, C3, T3 = 2, 64, 200
    Cs3 = C3 // s
    x3 = jax.random.normal(ks[6], (B3, C3, T3), dtype=jnp.float32)
    w1c = jax.random.normal(ks[1], (Cs3, C3), dtype=jnp.float32) * 0.05
    b1c = jax.random.normal(ks[2], (Cs3,), dtype=jnp.float32) * 0.05
    w2c = jax.random.normal(ks[3], (C3, Cs3), dtype=jnp.float32) * 0.05
    b2c = jax.random.normal(ks[4], (C3,), dtype=jnp.float32) * 0.05

    ref3 = se_connect_ref(x3, w1c, b1c, w2c, b2c)
    out3 = jax.block_until_ready(
        se_connect(x3, w1c, b1c, w2c, b2c, slab_budget_bytes=64 * 1024))
    assert out3.shape == (B3, C3, T3)
    assert jnp.allclose(out3, ref3, atol=1e-4, rtol=1e-4), "padded two-pass mismatch"

    # --- config 4: bf16 input on the fused path with chunked time reduction ---
    B4, C4, T4 = 2, 8, 384
    Cs4 = C4 // s
    x4 = jax.random.normal(ks[7], (B4, C4, T4), dtype=jnp.bfloat16)
    w1d = jax.random.normal(ks[1], (Cs4, C4), dtype=jnp.float32) * 0.1
    b1d = jax.random.normal(ks[2], (Cs4,), dtype=jnp.float32) * 0.1
    w2d = jax.random.normal(ks[3], (C4, Cs4), dtype=jnp.float32) * 0.1
    b2d = jax.random.normal(ks[4], (C4,), dtype=jnp.float32) * 0.1

    ref4 = se_connect_ref(x4.astype(jnp.float32), w1d, b1d, w2d, b2d)
    out4 = jax.block_until_ready(se_connect(x4, w1d, b1d, w2d, b2d))
    assert out4.shape == (B4, C4, T4)
    assert out4.dtype == jnp.bfloat16
    assert jnp.allclose(out4.astype(jnp.float32), ref4, atol=5e-2, rtol=5e-2), \
        "bf16 fused (chunked reduction) mismatch"

    print("KERNEL_OK")
</pallas_src>

<mosaic_0001>
module attributes {stable_mosaic.version = 11 : i64} {
  func.func @_se_fused_kernel(%arg0: i32, %arg1: memref<1x16x16xf32, #tpu.memory_space<vmem>>, %arg2: memref<16x4xf32, #tpu.memory_space<vmem>>, %arg3: memref<1x4xf32, #tpu.memory_space<vmem>>, %arg4: memref<4x16xf32, #tpu.memory_space<vmem>>, %arg5: memref<1x16xf32, #tpu.memory_space<vmem>>, %arg6: memref<1x16x16xf32, #tpu.memory_space<vmem>>) attributes {dimension_semantics = [#tpu.dimension_semantics<parallel>], iteration_bounds = array<i64: 2>, scalar_prefetch = 0 : i64, scratch_operands = 0 : i64, tpu.core_type = #tpu.core_type<tc>, window_params = [{transform_indices = @transform_0, window_bounds = array<i64: 1, 16, 16>}, {pipeline_mode = #tpu.pipeline_mode<synchronous>, transform_indices = @transform_1, window_bounds = array<i64: 16, 4>}, {pipeline_mode = #tpu.pipeline_mode<synchronous>, transform_indices = @transform_2, window_bounds = array<i64: 1, 4>}, {pipeline_mode = #tpu.pipeline_mode<synchronous>, transform_indices = @transform_3, window_bounds = array<i64: 4, 16>}, {pipeline_mode = #tpu.pipeline_mode<synchronous>, transform_indices = @transform_4, window_bounds = array<i64: 1, 16>}, {transform_indices = @transform_5, window_bounds = array<i64: 1, 16, 16>}]} {
    %cst = arith.constant 0.000000e+00 : f32
    %0 = vector.broadcast %cst : f32 to vector<1x16xf32>
    %c0 = arith.constant 0 : index
    %c0_0 = arith.constant 0 : index
    %c0_1 = arith.constant 0 : index
    %1 = vector.load %arg1[%c0, %c0_0, %c0_1] : memref<1x16x16xf32, #tpu.memory_space<vmem>>, vector<1x16x16xf32>
    %cst_2 = arith.constant dense<0.000000e+00> : vector<1x16xf32>
    %2 = vector.multi_reduction <add>, %1, %cst_2 [2] : vector<1x16x16xf32> to vector<1x16xf32>
    %3 = arith.addf %0, %2 : vector<1x16xf32>
    %cst_3 = arith.constant 6.250000e-02 : f32
    %4 = vector.broadcast %cst_3 : f32 to vector<1x16xf32>
    %5 = arith.mulf %3, %4 : vector<1x16xf32>
    %c0_4 = arith.constant 0 : index
    %c0_5 = arith.constant 0 : index
    %6 = vector.load %arg2[%c0_4, %c0_5] : memref<16x4xf32, #tpu.memory_space<vmem>>, vector<16x4xf32>
    %cst_6 = arith.constant dense<0.000000e+00> : vector<1x4xf32>
    %7 = tpu.matmul %5, %6, %cst_6 {dimension_numbers = #tpu.dot_dimension_numbers<[1], [0], [0], [1], [0, 0, 1, 1], [], []>} : vector<1x16xf32>, vector<16x4xf32>, vector<1x4xf32> -> vector<1x4xf32>
    %c0_7 = arith.constant 0 : index
    %c0_8 = arith.constant 0 : index
    %8 = vector.load %arg3[%c0_7, %c0_8] : memref<1x4xf32, #tpu.memory_space<vmem>>, vector<1x4xf32>
    %9 = arith.addf %7, %8 : vector<1x4xf32>
    %cst_9 = arith.constant 0.000000e+00 : f32
    %10 = vector.broadcast %cst_9 : f32 to vector<1x4xf32>
    %11 = arith.maximumf %9, %10 : vector<1x4xf32>
    %c0_10 = arith.constant 0 : index
    %c0_11 = arith.constant 0 : index
    %12 = vector.load %arg4[%c0_10, %c0_11] : memref<4x16xf32, #tpu.memory_space<vmem>>, vector<4x16xf32>
    %cst_12 = arith.constant dense<0.000000e+00> : vector<1x16xf32>
    %13 = tpu.matmul %11, %12, %cst_12 {dimension_numbers = #tpu.dot_dimension_numbers<[1], [0], [0], [1], [0, 0, 1, 1], [], []>} : vector<1x4xf32>, vector<4x16xf32>, vector<1x16xf32> -> vector<1x16xf32>
    %c0_13 = arith.constant 0 : index
    %c0_14 = arith.constant 0 : index
    %14 = vector.load %arg5[%c0_13, %c0_14] : memref<1x16xf32, #tpu.memory_space<vmem>>, vector<1x16xf32>
    %15 = arith.addf %13, %14 : vector<1x16xf32>
    %16 = arith.negf %15 : vector<1x16xf32>
    %17 = math.exp %16 : vector<1x16xf32>
    %cst_15 = arith.constant 1.000000e+00 : f32
    %18 = vector.broadcast %cst_15 : f32 to vector<1x16xf32>
    %19 = arith.addf %18, %17 : vector<1x16xf32>
    %20 = arith.divf %18, %19 : vector<1x16xf32>
    %c0_16 = arith.constant 0 : index
    %c0_17 = arith.constant 0 : index
    %c0_18 = arith.constant 0 : index
    %21 = vector.load %arg1[%c0_16, %c0_17, %c0_18] : memref<1x16x16xf32, #tpu.memory_space<vmem>>, vector<1x16x16xf32>
    %22 = vector.shape_cast %20 : vector<1x16xf32> to vector<1x16x1xf32>
    %23 = vector.broadcast %22 : vector<1x16x1xf32> to vector<1x16x16xf32>
    %24 = arith.mulf %21, %23 : vector<1x16x16xf32>
    %c0_19 = arith.constant 0 : index
    %c0_20 = arith.constant 0 : index
    %c0_21 = arith.constant 0 : index
    %25 = vector.load %arg6[%c0_19, %c0_20, %c0_21] : memref<1x16x16xf32, #tpu.memory_space<vmem>>, vector<1x16x16xf32>
    tpu.vector_store %arg6[%c0_19, %c0_20, %c0_21], %24 {strides = array<i32>} : memref<1x16x16xf32, #tpu.memory_space<vmem>>, vector<1x16x16xf32>,
    return
  }
  func.func @transform_0(%arg0: i32) -> (i32, i32, i32) {
    %c0_i32 = arith.constant 0 : i32
    %c0_i32_0 = arith.constant 0 : i32
    %c0_i32_1 = arith.constant 0 : i32
    return %arg0, %c0_i32, %c0_i32_0 : i32, i32, i32
  }
  func.func @transform_1(%arg0: i32) -> (i32, i32) {
    %c0_i32 = arith.constant 0 : i32
    %c0_i32_0 = arith.constant 0 : i32
    %c0_i32_1 = arith.constant 0 : i32
    return %c0_i32, %c0_i32_0 : i32, i32
  }
  func.func @transform_2(%arg0: i32) -> (i32, i32) {
    %c0_i32 = arith.constant 0 : i32
    %c0_i32_0 = arith.constant 0 : i32
    %c0_i32_1 = arith.constant 0 : i32
    return %c0_i32, %c0_i32_0 : i32, i32
  }
  func.func @transform_3(%arg0: i32) -> (i32, i32) {
    %c0_i32 = arith.constant 0 : i32
    %c0_i32_0 = arith.constant 0 : i32
    %c0_i32_1 = arith.constant 0 : i32
    return %c0_i32, %c0_i32_0 : i32, i32
  }
  func.func @transform_4(%arg0: i32) -> (i32, i32) {
    %c0_i32 = arith.constant 0 : i32
    %c0_i32_0 = arith.constant 0 : i32
    %c0_i32_1 = arith.constant 0 : i32
    return %c0_i32, %c0_i32_0 : i32, i32
  }
  func.func @transform_5(%arg0: i32) -> (i32, i32, i32) {
    %c0_i32 = arith.constant 0 : i32
    %c0_i32_0 = arith.constant 0 : i32
    %c0_i32_1 = arith.constant 0 : i32
    return %arg0, %c0_i32, %c0_i32_0 : i32, i32, i32
  }
}

</mosaic_0001>

<bundles_post_ra>
// kernel: tpu_custom_call.1
= control target key start
LH: loop header
LB: loop body
LE: loop exit
PB: predicated region body
PF: predicated region fallthrough
CT: control target
= control target key end

     0   :  { %10 = vsyncpa [#allocation3], 0  ;;  %s942_s0 = inlined_call_operand.hbm [shape: f32[2,16,16], index: 0, kind: input, shape index: {}]   ;;  %s943_s1 = inlined_call_operand.vmem [shape: f32[16,4], index: 1, kind: input, shape index: {}]   ;;  %s944_s2 = inlined_call_operand.vmem [shape: f32[1,4], index: 2, kind: input, shape index: {}]   ;;  %s945_s3 = inlined_call_operand.vmem [shape: f32[4,16], index: 3, kind: input, shape index: {}]   ;;  %s946_s4 = inlined_call_operand.vmem [shape: f32[1,16], index: 4, kind: input, shape index: {}]   ;;  %s947_s5 = inlined_call_operand.hbm [shape: f32[2,16,16], index: 5, kind: output, shape index: {}]  }
   0x1   :  { %12 = vsyncpa [#allocation3 + $0x1], 0 }
   0x2   :  { %13 = vsyncpa [#allocation4], 0 }
   0x3   :  { %15 = vsyncpa [#allocation4 + $0x1], 0  ;;  %s760_s18 = smov 0   ;;  %s762_s19 = smov 0  }
   0x4   :  { %s764_s20 = smov 0   ;;  %s766_s21 = smov 0  }
   0x5 LB: > { %s781_s22 = sadd.s32 4294967295, %s720_s21   ;;  %s535_s23 = sadd.s32 4294967294, %s720_s21   ;;  %s720_s21 = sphi %s766_s21, %s962_s21   ;;  %s716_s20 = sphi %s764_s20, %s961_s20   ;;  %s712_s19 = sphi %s762_s19, %s960_s19   ;;  %s708_s18 = sphi %s760_s18, %s959_s18  }
   0x6   : > { %s785_s24 = sadd.s32 1, %s720_s21   ;;  %s28_s25 = sadd.s32 1, %s716_s20 }
   0x7   : > { %s25_s26 = ssub.s32 %s720_s21, %s785_s24  ;;  %p35_p0 = scmp.ne.s32.totalorder %s716_s20, %s712_s19 }
   0x8   : > { %p26_p1 = scmp.eq.s32.totalorder %s25_s26, 0  ;;  %p36_p2 = scmp.eq.s32.totalorder %s720_s21, 0 }
   0x9   : > { %p41_p3 = scmp.ne.s32.totalorder %s712_s19, %s708_s18  ;;  %p42_p4 = scmp.eq.s32.totalorder %s781_s22, 0 }
   0xa   : > { %s797_s27 = scalar_select %p26_p1, %s716_s20, %s28_s25  }
   0xb   : > { %p799_p5 = por %p36_p2, %p35_p0  ;;  %p803_p6 = por %p42_p4, %p41_p3 }
   0xc   : > { %p149_p7 = scmp.eq.s32.totalorder %s781_s22, 1  ;;  %p155_p8 = scmp.eq.s32.totalorder %s535_s23, 1 }
   0xd   : > { %s951_s29 = scalar_select %p803_p6, 1, 0 }
   0xe   : > { %p584_p10 = scmp.lt.s32.totalorder %s720_s21, 2  ;;  %p810_p11 = por %p149_p7, %p35_p0 }
   0xf   : > { %p814_p12 = por %p155_p8, %p41_p3  ;;  %s187_s7 = sand.u32 1, %s716_s20  }
  0x10   : > { %s952_s30 = scalar_select %p810_p11, 1, 0 }
  0x11   : > { %s953_s6 = scalar_select %p814_p12, 1, 0 }
  0x12   : > { %s553_s8 = sshll.u32 %s720_s21, 8  ;;  %s538_s9 = sshll.u32 %s187_s7, 4 }
  0x13   : > { %s823_s12 = scalar_lea.hbm %s942_s0, %s553_s8  ;;  %s191_s13 = scalar_lea.vmem [#allocation2], %s538_s9 }
  0x14   : > { %s198_s14 = sshll.u32 %s191_s13, 4  ;;  %p827_p13 = pnand %p584_p10, %p799_p5  ;;  %s831_s14 = int_to_ptr.vmem [resolvable:$true] %s198_s14 }
  0x15   : > { %s833_s16 = scalar_lea.sflag [#allocation3], %s187_s7  ;;  %s628_s17 = scalar_lea.hbm %s823_s12, 256 }
  0x16   : > { %p629_p0 = scmp.ne.s32.totalorder %s823_s12, %s628_s17  ;;  %p630_p1 = pneg %p827_p13 }
  0x17   : > { %s633_s26 = scalar_lea.hbm %s942_s0, 512  ;;  %p634_p4 = scmp.lt.s32.totalorder %s823_s12, %s942_s0 }
  0x18   : > { %p631_p2 = pnand %p630_p1, %p629_p0  ;;  %p635_p5 = scmp.lt.s32.totalorder %s633_s26, %s628_s17 }
  0x1a   : > { %p632_p3 = pneg %p631_p2  ;;  %p636_p7 = por %p635_p5, %p634_p4 }
  0x1c   : > { %p637_p8 = pnand %p636_p7, %p632_p3 }
  0x1e   : > { %640 = shalt.err (!%p637_p8)
}
  0x1f   : > { %s641_s7 = scalar_lea.vmem %s831_s14, 256  ;;  %s722_s9 = smov [#allocation2]  }
  0x20   : > { %p642_p10 = scmp.ne.s32.totalorder %s831_s14, %s641_s7  ;;  %s646_s10 = sshll.u32 %s722_s9, 4  ;;  %s647_s10 = int_to_ptr.vmem [resolvable:$false] %s646_s10 }
  0x21   : > { %s648_s11 = scalar_lea.vmem %s647_s10, 512  ;;  %p649_p2 = scmp.lt.s32.totalorder %s831_s14, %s647_s10 }
  0x22   : > { %p644_p9 = pnand %p642_p10, %p630_p1  ;;  %p650_p12 = scmp.lt.s32.totalorder %s648_s11, %s641_s7 }
  0x24   : > { %p645_p0 = pneg %p644_p9  ;;  %p651_p11 = por %p650_p12, %p649_p2 }
  0x26   : > { %p652_p6 = pnand %p651_p11, %p645_p0 }
  0x28   : > { %655 = shalt.err (!%p652_p6)
}
  0x29   : > { %s723_s13 = smov 128   ;;  %s724_s17 = smov 8  }
  0x2a   : > { %579 = dma.hbm_to_vmem [thread:$0]  (!%p827_p13), %s823_s12, 256, %s831_s14, %s833_s16, %s723_s13, %s723_s13, %s724_s17  }
  0x2b   : > { %p541_p9 = scmp.ge.s32.totalorder %s720_s21, 1  ;;  %p206_p1 = scmp.lt.s32.totalorder %s720_s21, 3 }
  0x2d   : > { %p207_p3 = pnand %p541_p9, %p206_p1 }
  0x2e   : > { %s857_s23 = sand.u32 (!%p207_p3), 1, %s712_s19   ;;  %p955_p6 = scmp.ne.s32.totalorder (!%p207_p3), %s951_s29, 0 }
  0x2f   : > { %210 = sbr.rel (%p207_p3) target bundleno = 763 (0x2fb), region = 40  ;;  %s542_s25 = sshll.u32 (!%p207_p3), %s857_s23, 4 }
  0x30   : > { %s213_s26 = scalar_lea.sflag (!%p207_p3), [#allocation3], %s857_s23  ;;  %s216_s28 = scalar_lea.vmem (!%p207_p3), [#allocation2], %s542_s25 }
  0x34   : > { %699 = dma.done.wait (%p955_p6), %s213_s26, 256  }
  0x35   : > { %701 = vsyncadd (%p955_p6), %s213_s26, 4294967040  ;;  %vm245_vm0 = vcmask 130048   ;;  %v243_v0 = vld [vmem:[%s216_s28] sm:$0xff]  ;;  %v867_v1 = vld [vmem:[%s216_s28 + $0x8] sm:$0xff]  ;;  %v725_v4 = vmov 0.0   ;;  %vm726_vm1 = vmmov 0   ;;  %v261_v7 = vlaneseq }
  0x36   : > { %v246_v2 = vsel %vm245_vm0, %v243_v0, 0.0  ;;  %v249_v3 = vsel %vm245_vm0, %v867_v1, 0.0  ;;  %560 = vmatprep.subr.mxu0 %v725_v4  ;;  %v257_v5 = vld [vmem:[%s943_s1 + $0x8] sm:$0xff]  ;;  %567 = vmatprep.subr.mxu1 %v725_v4  ;;  %v256_v6 = vld [vmem:[%s943_s1] sm:$0xff]  ;;  %vm272_vm2 = vcmask 130112   ;;  %vm353_vm3 = vcmask 1043456  }
  0x37   : > { %247 = vadd.xlane.f32.xlu0 %v246_v2  ;;  %561 = vmatpush3.msra.mxu0 %v257_v5  ;;  %v262_v8 = vand.u32 127, %v261_v7  ;;  %v264_v9 = vshrl.u32 %v261_v7, 7  ;;  %v347_v20 = vld [vmem:[%s945_s3] sm:$0xf]  ;;  %vm349_vm4 = vcmask 31744   ;;  %s242_s13 = scalar_lea.vmem [#allocation5], %s542_s25 }
  0x38   : > { %562 = vmatprep.subr.mxu0 %v725_v4  ;;  %564 = vmatprep.mubr.msk.f32.mxu0 %vm726_vm1, %v725_v4  ;;  %v258_v21 = vld [vmem:[%s944_s2] sm:$0x1]  ;;  %s462_s17 = sshll.u32 %s242_s13, 4  ;;  %s554_s26 = sshll.u32 %s781_s22, 8  ;;  %s891_s17 = int_to_ptr.vmem [resolvable:$true] %s462_s17 }
  0x39   : > { %563 = vmatpush3.msra.mxu0 %v256_v6  ;;  %569 = vmatprep.mubr.msk.f32.mxu1 %vm726_vm1, %v725_v4  ;;  %v267_v10 = vadd.s32 4294967288, %v262_v8  ;;  %v265_v12 = vsub.s32 %v262_v8, %v264_v9  ;;  %v348_v26 = vld [vmem:[%s946_s4] sm:$0x1]  ;;  %v435_v33 = vsub.s32 0, %v264_v9  ;;  %s897_s14 = scalar_lea.hbm %s947_s5, %s554_s26  ;;  %s449_s25 = scalar_lea.sflag [#allocation4], %s857_s23 }
  0x3a   : > { %568 = vmatpush3.msk.msra.mxu1 %vm353_vm3, %v347_v20  ;;  %s656_s29 = scalar_lea.vmem %s891_s17, 256  ;;  %p956_p12 = scmp.ne.s32.totalorder %s952_s30, 0 }
  0x3b   : > { %250 = vadd.xlane.f32.xlu0 %v249_v3  ;;  %v270_v14 = vsub.s32 %v267_v10, %v264_v9  ;;  %p657_p11 = scmp.ne.s32.totalorder %s891_s17, %s656_s29  ;;  %s727_s22 = smov [#allocation5]  }
  0x3c   : > { %s660_s15 = sshll.u32 %s727_s22, 4  ;;  %s661_s15 = int_to_ptr.vmem [resolvable:$false] %s660_s15 }
  0x3d   : > { %p658_p13 = pnand %p657_p11, %p956_p12  ;;  %s662_s16 = scalar_lea.vmem %s661_s15, 512 }
  0x3e   : > { %p663_p5 = scmp.lt.s32.totalorder %s891_s17, %s661_s15  ;;  %p664_p7 = scmp.lt.s32.totalorder %s662_s16, %s656_s29 }
  0x3f   : > { %p659_p4 = pneg %p658_p13 }
  0x40   : > { %p665_p8 = por %p664_p7, %p663_p5 }
  0x42   : > { %p666_p10 = pnand %p665_p8, %p659_p4 }
  0xc0   : > { %v248_v11 = vpop.xlane.xlu0 %247 }
  0xc1   : > { %v254_v13 = vmul.f32 0.0625, %v248_v11 }
  0xc3   : > { %v266_v17 = vrot.slane %v254_v13, %v265_v12 }
  0xc4   : > { %v251_v15 = vpop.xlane.xlu0 %250 }
  0xc5   : > { %v255_v16 = vmul.f32 0.0625, %v251_v15 }
  0xc7   : > { %v271_v18 = vrot.slane %v255_v16, %v270_v14 }
  0xc9   : > { %v273_v19 = vsel %vm272_vm2, %v271_v18, %v266_v17 }
  0xca   : > { %565 = vmatmul.mubr.msk.f32.vlgmr.msra.gmra.mxu0 %vm245_vm0, %v273_v19 }
 0x18a   : > { %v342_v22 = vpop.f32.mrf.mxu0 }
 0x18b   : > { %v343_v23 = vadd.f32 %v342_v22, %v258_v21 }
 0x18c   : > { %v566_v24 = vpop.f32.mrf.mxu0 }
 0x18d   : > { %v346_v25 = vmax.f32 %v343_v23, 0.0 }
 0x18f   : > { %570 = vmatmul.mubr.msk.f32.vlgmr.msra.gmra.mxu1 %vm349_vm4, %v346_v25 }
 0x24f   : > { %v423_v27 = vpop.f32.mrf.mxu1 }
 0x250   : > { %v424_v28 = vadd.f32 %v423_v27, %v348_v26 }
 0x251   : > { %v571_v29 = vpop.f32.mrf.mxu1 }
 0x252   : > { %v547_v30 = vmul.f32 -1.442695, %v424_v28 }
 0x254   : > { %624 = vpow2.f32 %v547_v30 }
 0x261   : > { %v625_v31 = vpop.eup %624 }
 0x262   : > { %v430_v32 = vadd.f32 1.0, %v625_v31 }
 0x264   : > { %626 = vrcp.f32 %v430_v32 }
 0x271   : > { %v627_v34 = vpop.eup %626 }
 0x272   : > { %v436_v35 = vrot.slane %v627_v34, %v435_v33 }
 0x274   : > { %438 = vbcast.lane.b32.xlu1 %v436_v35, 256 }
 0x278   : > { %442 = vbcast.lane.b32.xlu1 %v436_v35, 264 }
 0x2e6   : > { %v439_v36 = vpop.permute.xlu1 %438 }
 0x2e7   : > { %v444_v37 = vmul.f32 %v439_v36, %v243_v0 }
 0x2e9   : > { %446 = vst.msk [vmem:[%s242_s13] sm:$0xff] %vm245_vm0, %v444_v37 }
 0x2ea   : > { %v443_v38 = vpop.permute.xlu1 %442 }
 0x2eb   : > { %v445_v39 = vmul.f32 %v443_v38, %v867_v1 }
 0x2ed   : > { %447 = vst.msk [vmem:[%s242_s13 + $0x8] sm:$0xff] %vm245_vm0, %v445_v39 }
 0x2ee   : > { %669 = shalt.err (!%p666_p10)
}
 0x2ef   : > { %s670_s8 = scalar_lea.hbm %s897_s14, 256  ;;  %s674_s10 = scalar_lea.hbm %s947_s5, 512 }
 0x2f0   : > { %p671_p0 = scmp.ne.s32.totalorder %s897_s14, %s670_s8  ;;  %p675_p1 = scmp.lt.s32.totalorder %s897_s14, %s947_s5 }
 0x2f1   : > { %p676_p3 = scmp.lt.s32.totalorder %s674_s10, %s670_s8 }
 0x2f2   : > { %p672_p2 = pnand %p671_p0, %p956_p12 }
 0x2f3   : > { %p677_p6 = por %p676_p3, %p675_p1 }
 0x2f4   : > { %p673_p9 = pneg %p672_p2 }
 0x2f6   : > { %p678_p11 = pnand %p677_p6, %p673_p9 }
 0x2f8   : > { %681 = shalt.err (!%p678_p11)
}
 0x2f9   : > { %s728_s26 = smov 128   ;;  %s729_s28 = smov 8  }
 0x2fa   : > { %574 = dma.vmem_to_hbm [thread:$0]  (%p956_p12), %s891_s17, 256, %s897_s14, %s449_s25, %s728_s26, %s728_s26, %s729_s28  }
 0x2fb PF: > { %s477_s12 = sand.u32 1, %s708_s18   ;;  %p957_p13 = scmp.ne.s32.totalorder %s953_s6, 0 }
 0x2fc   : > { %p958_p4 = scmp.ge.s32.totalorder %s720_s21, 2  ;;  %s478_s29 = scalar_lea.sflag [#allocation4], %s477_s12 }
 0x2fe   : > { %p581_p5 = pnand %p958_p4, %p957_p13 }
 0x300   : > { %p582_p7 = pneg %p581_p5 }
 0x302   : > { %703 = dma.done.wait (%p582_p7), %s478_s29, 256  }
 0x303   : > { %705 = vsyncadd (%p582_p7), %s478_s29, 4294967040  ;;  %p18_p8 = scmp.ge.s32.totalorder %s785_s24, 4   ;;  %s959_s18 = smov %s712_s19 }
 0x304   : > { %s960_s19 = smov %s716_s20  ;;  %s961_s20 = smov %s797_s27 }
 0x305   : > { %s962_s21 = smov %s785_s24  ;;  %20 = sbr.rel (!%p18_p8) target bundleno = 5 (0x5), region = 85 }
 0x30a   :  { %483 = vsyncpa [#allocation3], 1 }
 0x30b   :  { %485 = vsyncpa [#allocation3 + $0x1], 1 }
 0x30c   :  { %486 = vsyncpa [#allocation4], 1 }
 0x30d   :  { %488 = vsyncpa [#allocation4 + $0x1], 1 }

</bundles_post_ra>
